<compile_context>
chip_gen: v5e
topology: v5e:2x2
jax: 0.10.0
libtpu: 0.0.40
codegen_flags: <defaults>
</compile_context>

<pallas_src>
from functools import partial

import jax
import jax.numpy as jnp
from jax.experimental import pallas as pl
from jax.experimental.pallas import tpu as pltpu


def _round_up(x, m):
    return ((x + m - 1) // m) * m


# -------- Kernel A: conv matmul (bf16 MXU, f32 acc) + per-group BN partial stats
def conv_stats_kernel(cols_ref, w_ref, conv_ref, sum_ref, ssq_ref):
    i = pl.program_id(1)  # inner ("arbitrary") row-tile axis
    acc = jnp.dot(cols_ref[...], w_ref[...], preferred_element_type=jnp.float32)
    conv_ref[...] = acc.astype(conv_ref.dtype)

    # Per-group resident accumulators (block index depends only on the outer
    # "parallel" group axis), zeroed at the start of each group's inner loop.
    @pl.when(i == 0)
    def _():
        sum_ref[...] = jnp.zeros_like(sum_ref)
        ssq_ref[...] = jnp.zeros_like(ssq_ref)

    # Stats are accumulated in f32 from the f32 MXU accumulator (padded rows of
    # cols are zero and contribute nothing).
    sum_ref[0:1, :] += jnp.sum(acc, axis=0, keepdims=True)
    ssq_ref[0:1, :] += jnp.sum(acc * acc, axis=0, keepdims=True)


# -------- Kernel B: fused BN fold (stats -> scale/shift) + affine + ReLU ---------
def bn_relu_kernel(conv_ref, sum_ref, ssq_ref, gamma_ref, beta_ref, o_ref, *,
                   inv_count, eps):
    # Reduce the per-group partial sums (rows other than each group's row 0 are
    # zero, so a plain sum over all rows is exact).
    s = jnp.sum(sum_ref[...], axis=0, keepdims=True)
    q = jnp.sum(ssq_ref[...], axis=0, keepdims=True)
    mean = s * inv_count
    var = jnp.maximum(q * inv_count - mean * mean, 0.0)   # biased (training) var
    scale = gamma_ref[...] * jax.lax.rsqrt(var + eps)     # EUP rsqrt
    shift = beta_ref[...] - mean * scale
    conv = conv_ref[...].astype(jnp.float32)
    o_ref[...] = jnp.maximum(conv * scale + shift, 0.0)


def basic_block_forward(x_nchw, w_oihw, gamma, beta, eps=1e-5, tm=512):
    """NCHW in, NCHW out — matches PyTorch BasicBlock.forward (training-mode BN)."""
    N, Cin, H, W = x_nchw.shape
    Cout, Cin_w, K, K2 = w_oihw.shape
    assert Cin_w == Cin and K == K2 and K % 2 == 1
    pad = (K - 1) // 2

    M = N * H * W                          # output rows (pixels)
    KC = K * K * Cin                       # im2col contraction dim
    TM = _round_up(min(tm, M), 16)         # bf16 sublane packing: multiple of 16
    n_tiles = -(-M // TM)
    G = 2 if n_tiles >= 2 else 1           # megacore group split (v7x has 2 TCs)
    n_inner = -(-n_tiles // G)
    n_tiles = G * n_inner
    M_pad = n_tiles * TM
    KC_pad = _round_up(KC, 128)            # lane-dense contraction
    CO_pad = _round_up(Cout, 128)          # lane-dense output channels

    # --- JAX glue: layout conversion + im2col + zero padding (bf16) --------------
    x_nhwc = jnp.transpose(x_nchw, (0, 2, 3, 1)).astype(jnp.bfloat16)
    x_sp = jnp.pad(x_nhwc, ((0, 0), (pad, pad), (pad, pad), (0, 0)))
    taps = [x_sp[:, kh:kh + H, kw:kw + W, :] for kh in range(K) for kw in range(K)]
    cols = jnp.concatenate(taps, axis=-1).reshape(M, KC)
    cols = jnp.pad(cols, ((0, M_pad - M), (0, KC_pad - KC)))

    w_flat = jnp.transpose(w_oihw, (2, 3, 1, 0)).astype(jnp.bfloat16).reshape(KC, Cout)
    w_flat = jnp.pad(w_flat, ((0, KC_pad - KC), (0, CO_pad - Cout)))

    gamma_p = jnp.pad(gamma.astype(jnp.float32), (0, CO_pad - Cout)).reshape(1, CO_pad)
    beta_p = jnp.pad(beta.astype(jnp.float32), (0, CO_pad - Cout)).reshape(1, CO_pad)

    # --- Pass 1: conv matmul + per-group BN partial sums -------------------------
    conv, s, ssq = pl.pallas_call(
        conv_stats_kernel,
        out_shape=(
            jax.ShapeDtypeStruct((M_pad, CO_pad), jnp.bfloat16),   # conv intermediate (bf16)
            jax.ShapeDtypeStruct((G * 8, CO_pad), jnp.float32),    # per-group sums
            jax.ShapeDtypeStruct((G * 8, CO_pad), jnp.float32),    # per-group sum-sq
        ),
        grid=(G, n_inner),
        in_specs=[
            pl.BlockSpec((TM, KC_pad), lambda g, i: (g * n_inner + i, 0)),
            # Constant index map -> weight DMA'd once; only re-fetched if the
            # block index changed.
            pl.BlockSpec((KC_pad, CO_pad), lambda g, i: (0, 0)),
        ],
        out_specs=(
            pl.BlockSpec((TM, CO_pad), lambda g, i: (g * n_inner + i, 0)),
            pl.BlockSpec((8, CO_pad), lambda g, i: (g, 0)),   # resident per group
            pl.BlockSpec((8, CO_pad), lambda g, i: (g, 0)),   # resident per group
        ),
        compiler_params=pltpu.CompilerParams(
            dimension_semantics=("parallel", "arbitrary"),
            vmem_limit_bytes=48 * 1024 * 1024),
    )(cols, w_flat)

    # --- Pass 2: fused BN fold + affine + ReLU ------------------------------------
    out_flat = pl.pallas_call(
        partial(bn_relu_kernel, inv_count=1.0 / float(M), eps=float(eps)),
        out_shape=jax.ShapeDtypeStruct((M_pad, CO_pad), jnp.float32),
        grid=(n_tiles,),
        in_specs=[
            pl.BlockSpec((TM, CO_pad), lambda i: (i, 0)),
            pl.BlockSpec((G * 8, CO_pad), lambda i: (0, 0)),
            pl.BlockSpec((G * 8, CO_pad), lambda i: (0, 0)),
            pl.BlockSpec((1, CO_pad), lambda i: (0, 0)),
            pl.BlockSpec((1, CO_pad), lambda i: (0, 0)),
        ],
        out_specs=pl.BlockSpec((TM, CO_pad), lambda i: (i, 0)),
        compiler_params=pltpu.CompilerParams(
            dimension_semantics=("parallel",),
            vmem_limit_bytes=48 * 1024 * 1024),
    )(conv, s, ssq, gamma_p, beta_p)

    out = out_flat[:M, :Cout].reshape(N, H, W, Cout)
    return jnp.transpose(out, (0, 3, 1, 2))


def _reference(x, w, gamma, beta, eps=1e-5):
    """Pure-JAX reference mirroring the PyTorch forward (training-mode BN)."""
    conv = jax.lax.conv_general_dilated(
        x, w, window_strides=(1, 1), padding="SAME",
        dimension_numbers=("NCHW", "OIHW", "NCHW"))
    mean = conv.mean(axis=(0, 2, 3), keepdims=True)
    var = ((conv - mean) ** 2).mean(axis=(0, 2, 3), keepdims=True)
    y = (conv - mean) / jnp.sqrt(var + eps)
    y = y * gamma.reshape(1, -1, 1, 1) + beta.reshape(1, -1, 1, 1)
    return jnp.maximum(y, 0.0)


if __name__ == "__main__":
    # BasicBlock(in_planes=4, out_planes=8, kernel_size=3), input (2, 4, 16, 16)
    in_planes, out_planes, kernel_size = 4, 8, 3
    N, H, W = 2, 16, 16

    key = jax.random.PRNGKey(0)
    kx, kw, kg, kb = jax.random.split(key, 4)
    x = jax.random.normal(kx, (N, in_planes, H, W), dtype=jnp.float32)
    w = 0.1 * jax.random.normal(
        kw, (out_planes, in_planes, kernel_size, kernel_size), dtype=jnp.float32)
    gamma = 1.0 + 0.1 * jax.random.normal(kg, (out_planes,), dtype=jnp.float32)
    beta = 0.05 * jax.random.normal(kb, (out_planes,), dtype=jnp.float32)

    out = jax.block_until_ready(basic_block_forward(x, w, gamma, beta))
    ref = jax.block_until_ready(_reference(x, w, gamma, beta))

    assert out.shape == (N, out_planes, H, W)
    # bf16 MXU path + bf16 conv intermediate -> compare at bf16-appropriate tolerance.
    assert jnp.allclose(out, ref, atol=2e-2, rtol=2e-2), "mismatch vs reference"

    print("KERNEL_OK")
</pallas_src>

<mosaic_0001>
module attributes {stable_mosaic.version = 11 : i64} {
  func.func @conv_stats_kernel(%arg0: i32, %arg1: i32, %arg2: memref<512x128xbf16, #tpu.memory_space<vmem>>, %arg3: memref<128x128xbf16, #tpu.memory_space<vmem>>, %arg4: memref<512x128xbf16, #tpu.memory_space<vmem>>, %arg5: memref<8x128xf32, #tpu.memory_space<vmem>>, %arg6: memref<8x128xf32, #tpu.memory_space<vmem>>) attributes {dimension_semantics = [#tpu.dimension_semantics<parallel>, #tpu.dimension_semantics<arbitrary>], iteration_bounds = array<i64: 1, 1>, scalar_prefetch = 0 : i64, scratch_operands = 0 : i64, tpu.core_type = #tpu.core_type<tc>, window_params = [{transform_indices = @transform_0, window_bounds = array<i64: 512, 128>}, {pipeline_mode = #tpu.pipeline_mode<synchronous>, transform_indices = @transform_1, window_bounds = array<i64: 128, 128>}, {transform_indices = @transform_2, window_bounds = array<i64: 512, 128>}, {transform_indices = @transform_3, window_bounds = array<i64: 8, 128>}, {transform_indices = @transform_4, window_bounds = array<i64: 8, 128>}]} {
    %c0 = arith.constant 0 : index
    %c0_0 = arith.constant 0 : index
    %0 = vector.load %arg2[%c0, %c0_0] : memref<512x128xbf16, #tpu.memory_space<vmem>>, vector<512x128xbf16>
    %c0_1 = arith.constant 0 : index
    %c0_2 = arith.constant 0 : index
    %1 = vector.load %arg3[%c0_1, %c0_2] : memref<128x128xbf16, #tpu.memory_space<vmem>>, vector<128x128xbf16>
    %cst = arith.constant dense<0.000000e+00> : vector<512x128xf32>
    %2 = tpu.matmul %0, %1, %cst {dimension_numbers = #tpu.dot_dimension_numbers<[1], [0], [0], [1], [0, 0, 1, 1], [], []>} : vector<512x128xbf16>, vector<128x128xbf16>, vector<512x128xf32> -> vector<512x128xf32>
    %3 = arith.truncf %2 : vector<512x128xf32> to vector<512x128xbf16>
    %c0_3 = arith.constant 0 : index
    %c0_4 = arith.constant 0 : index
    %4 = vector.load %arg4[%c0_3, %c0_4] : memref<512x128xbf16, #tpu.memory_space<vmem>>, vector<512x128xbf16>
    tpu.vector_store %arg4[%c0_3, %c0_4], %3 {strides = array<i32>} : memref<512x128xbf16, #tpu.memory_space<vmem>>, vector<512x128xbf16>,
    %c0_i32 = arith.constant 0 : i32
    %5 = arith.cmpi eq, %arg1, %c0_i32 : i32
    %6 = arith.extui %5 : i1 to i32
    %c0_i32_5 = arith.constant 0 : i32
    %7 = arith.cmpi ne, %6, %c0_i32_5 : i32
    scf.if %7 {
      %cst_16 = arith.constant 0.000000e+00 : f32
      %19 = vector.broadcast %cst_16 : f32 to vector<8x128xf32>
      %c0_17 = arith.constant 0 : index
      %c0_18 = arith.constant 0 : index
      %20 = vector.load %arg5[%c0_17, %c0_18] : memref<8x128xf32, #tpu.memory_space<vmem>>, vector<8x128xf32>
      tpu.vector_store %arg5[%c0_17, %c0_18], %19 {strides = array<i32>} : memref<8x128xf32, #tpu.memory_space<vmem>>, vector<8x128xf32>,
      %cst_19 = arith.constant 0.000000e+00 : f32
      %21 = vector.broadcast %cst_19 : f32 to vector<8x128xf32>
      %c0_20 = arith.constant 0 : index
      %c0_21 = arith.constant 0 : index
      %22 = vector.load %arg6[%c0_20, %c0_21] : memref<8x128xf32, #tpu.memory_space<vmem>>, vector<8x128xf32>
      tpu.vector_store %arg6[%c0_20, %c0_21], %21 {strides = array<i32>} : memref<8x128xf32, #tpu.memory_space<vmem>>, vector<8x128xf32>,
    } else {
    }
    %c0_6 = arith.constant 0 : index
    %c0_7 = arith.constant 0 : index
    %8 = vector.load %arg5[%c0_6, %c0_7] : memref<8x128xf32, #tpu.memory_space<vmem>>, vector<1x128xf32>
    %cst_8 = arith.constant dense<0.000000e+00> : vector<128xf32>
    %9 = vector.multi_reduction <add>, %2, %cst_8 [0] : vector<512x128xf32> to vector<128xf32>
    %10 = vector.shape_cast %9 : vector<128xf32> to vector<1x128xf32>
    %11 = arith.addf %8, %10 : vector<1x128xf32>
    %c0_9 = arith.constant 0 : index
    %c0_10 = arith.constant 0 : index
    %12 = vector.load %arg5[%c0_9, %c0_10] : memref<8x128xf32, #tpu.memory_space<vmem>>, vector<1x128xf32>
    tpu.vector_store %arg5[%c0_9, %c0_10], %11 {strides = array<i32>} : memref<8x128xf32, #tpu.memory_space<vmem>>, vector<1x128xf32>,
    %c0_11 = arith.constant 0 : index
    %c0_12 = arith.constant 0 : index
    %13 = vector.load %arg6[%c0_11, %c0_12] : memref<8x128xf32, #tpu.memory_space<vmem>>, vector<1x128xf32>
    %14 = arith.mulf %2, %2 : vector<512x128xf32>
    %cst_13 = arith.constant dense<0.000000e+00> : vector<128xf32>
    %15 = vector.multi_reduction <add>, %14, %cst_13 [0] : vector<512x128xf32> to vector<128xf32>
    %16 = vector.shape_cast %15 : vector<128xf32> to vector<1x128xf32>
    %17 = arith.addf %13, %16 : vector<1x128xf32>
    %c0_14 = arith.constant 0 : index
    %c0_15 = arith.constant 0 : index
    %18 = vector.load %arg6[%c0_14, %c0_15] : memref<8x128xf32, #tpu.memory_space<vmem>>, vector<1x128xf32>
    tpu.vector_store %arg6[%c0_14, %c0_15], %17 {strides = array<i32>} : memref<8x128xf32, #tpu.memory_space<vmem>>, vector<1x128xf32>,
    return
  }
  func.func @transform_0(%arg0: i32, %arg1: i32) -> (i32, i32) {
    %c1_i32 = arith.constant 1 : i32
    %0 = arith.muli %arg0, %c1_i32 : i32
    %1 = arith.addi %0, %arg1 : i32
    %c0_i32 = arith.constant 0 : i32
    %c0_i32_0 = arith.constant 0 : i32
    return %1, %c0_i32 : i32, i32
  }
  func.func @transform_1(%arg0: i32, %arg1: i32) -> (i32, i32) {
    %c0_i32 = arith.constant 0 : i32
    %c0_i32_0 = arith.constant 0 : i32
    %c0_i32_1 = arith.constant 0 : i32
    return %c0_i32, %c0_i32_0 : i32, i32
  }
  func.func @transform_2(%arg0: i32, %arg1: i32) -> (i32, i32) {
    %c1_i32 = arith.constant 1 : i32
    %0 = arith.muli %arg0, %c1_i32 : i32
    %1 = arith.addi %0, %arg1 : i32
    %c0_i32 = arith.constant 0 : i32
    %c0_i32_0 = arith.constant 0 : i32
    return %1, %c0_i32 : i32, i32
  }
  func.func @transform_3(%arg0: i32, %arg1: i32) -> (i32, i32) {
    %c0_i32 = arith.constant 0 : i32
    %c0_i32_0 = arith.constant 0 : i32
    return %arg0, %c0_i32 : i32, i32
  }
  func.func @transform_4(%arg0: i32, %arg1: i32) -> (i32, i32) {
    %c0_i32 = arith.constant 0 : i32
    %c0_i32_0 = arith.constant 0 : i32
    return %arg0, %c0_i32 : i32, i32
  }
}

</mosaic_0001>

<bundles_post_ra>
// kernel: tpu_custom_call.1
= control target key start
LH: loop header
LB: loop body
LE: loop exit
PB: predicated region body
PF: predicated region fallthrough
CT: control target
= control target key end

     0   :  { %10 = vsyncpa [#allocation3], 0  ;;  %s1844_s0 = inlined_call_operand.hbm [shape: bf16[512,128], index: 0, kind: input, shape index: {}]   ;;  %s1845_s1 = inlined_call_operand.hbm [shape: bf16[128,128], index: 1, kind: input, shape index: {}]   ;;  %s1846_s2 = inlined_call_operand.hbm [shape: bf16[512,128], index: 2, kind: output, shape index: {0}]   ;;  %s1847_s3 = inlined_call_operand.hbm [shape: f32[8,128], index: 3, kind: output, shape index: {1}]   ;;  %s1848_s4 = inlined_call_operand.hbm [shape: f32[8,128], index: 4, kind: output, shape index: {2}]  }
   0x1   :  { %11 = vsyncpa [#allocation6], 0 }
   0x2   :  { %12 = vsyncpa [#allocation4], 0 }
   0x3   :  { %13 = vsyncpa [#allocation9], 0  ;;  %s22_s17 = sshll.u32 %s1844_s0, 4  ;;  %s1493_s18 = smov [#allocation2]   ;;  %s23_s17 = int_to_ptr.hbm [resolvable:$true] %s22_s17 }
   0x4   :  { %s24_s19 = sshll.u32 %s1493_s18, 4  ;;  %s35_s22 = sshll.u32 %s1845_s1, 4  ;;  %s25_s19 = int_to_ptr.vmem [resolvable:$true] %s24_s19  ;;  %s36_s22 = int_to_ptr.hbm [resolvable:$true] %s35_s22 }
   0x5   :  { %s1494_s23 = smov 64   ;;  %s1495_s24 = smov 4  }
   0x6   :  { %30 = dma.hbm_to_vmem [thread:$0]  %s23_s17, 4096, %s25_s19, [#allocation3], %s1494_s23, %s1494_s23, %s1495_s24  }
   0x7   :  { %s1496_s25 = smov [#allocation5]  }
   0x8   :  { %s37_s26 = sshll.u32 %s1496_s25, 4  ;;  %s38_s26 = int_to_ptr.vmem [resolvable:$true] %s37_s26 }
   0x9   :  { %43 = dma.hbm_to_vmem [thread:$0]  %s36_s22, 1024, %s38_s26, [#allocation6], %s1494_s23, %s1494_s23, %s1495_s24  }
   0xa   :  { %1485 = dma.done.wait [#allocation3], 4096  }
   0xb   :  { %1486 = vsyncadd [#allocation3], 4294963200 }
   0xc   :  { %1487 = dma.done.wait [#allocation6], 1024  }
   0xd   :  { %1488 = vsyncadd [#allocation6], 4294966272  ;;  %v1141_v0 = vld [vmem:[#allocation5 + $0x38] sm:$0xff]  ;;  %v1140_v1 = vld [vmem:[#allocation5 + $0x30] sm:$0xff]  ;;  %s1497_s0 = smov [#allocation7]   ;;  %s897_s29 = sshll.u32 %s1846_s2, 4  ;;  %s898_s29 = int_to_ptr.hbm [resolvable:$true] %s897_s29 }
   0xe   :  { %376 = vmatpush.bf16.msra.mxu0 %v1141_v0  ;;  %1333 = vmatpush.bf16.msra.mxu1 %v1141_v0  ;;  %v1139_v2 = vld [vmem:[#allocation5 + $0x28] sm:$0xff]  ;;  %v1138_v3 = vld [vmem:[#allocation5 + $0x20] sm:$0xff]  ;;  %v1137_v4 = vld [vmem:[#allocation5 + $0x18] sm:$0xff]  ;;  %s895_s1 = sshll.u32 %s1497_s0, 4  ;;  %s1499_s2 = smov [#allocation8]   ;;  %s896_s1 = int_to_ptr.vmem [resolvable:$true] %s895_s1 }
   0xf   :  { %1334 = vmatpush.bf16.msra.mxu2 %v1141_v0  ;;  %1335 = vmatpush.bf16.msra.mxu3 %v1141_v0  ;;  %v1136_v5 = vld [vmem:[#allocation5 + $0x10] sm:$0xff]  ;;  %v1135_v6 = vld [vmem:[#allocation5 + $0x8] sm:$0xff]  ;;  %v1134_v7 = vld [vmem:[#allocation5] sm:$0xff]  ;;  %s909_s30 = sshll.u32 %s1499_s2, 4  ;;  %s911_s7 = sshll.u32 %s1847_s3, 4  ;;  %s910_s30 = int_to_ptr.vmem [resolvable:$true] %s909_s30  ;;  %s912_s7 = int_to_ptr.hbm [resolvable:$true] %s911_s7 }
  0x10   :  { %v1102_v8 = vld [vmem:[#allocation2] sm:$0xff]  ;;  %v1103_v10 = vld [vmem:[#allocation2 + $0x8] sm:$0xff]  ;;  %v1104_v13 = vld [vmem:[#allocation2 + $0x10] sm:$0xff]  ;;  %s1500_s8 = smov [#allocation10]   ;;  %s922_s12 = sshll.u32 %s1848_s4, 4  ;;  %s923_s12 = int_to_ptr.hbm [resolvable:$true] %s922_s12 }
  0x11   :  { %v1110_v9 = vld [vmem:[#allocation2 + $0x40] sm:$0xff]  ;;  %v1111_v11 = vld [vmem:[#allocation2 + $0x48] sm:$0xff]  ;;  %v1112_v14 = vld [vmem:[#allocation2 + $0x50] sm:$0xff]  ;;  %s920_s9 = sshll.u32 %s1500_s8, 4  ;;  %s921_s9 = int_to_ptr.vmem [resolvable:$true] %s920_s9 }
  0x12   :  { %377 = vmatpush.bf16.msra.mxu0 %v1140_v1  ;;  %1336 = vmatpush.bf16.msra.mxu1 %v1140_v1  ;;  %v1118_v12 = vld [vmem:[#allocation2 + $0x80] sm:$0xff]  ;;  %v1119_v15 = vld [vmem:[#allocation2 + $0x88] sm:$0xff]  ;;  %v1105_v16 = vld [vmem:[#allocation2 + $0x18] sm:$0xff] }
  0x13   :  { %1337 = vmatpush.bf16.msra.mxu2 %v1140_v1  ;;  %1338 = vmatpush.bf16.msra.mxu3 %v1140_v1  ;;  %v1113_v17 = vld [vmem:[#allocation2 + $0x58] sm:$0xff]  ;;  %v1120_v18 = vld [vmem:[#allocation2 + $0x90] sm:$0xff]  ;;  %v1126_v19 = vld [vmem:[#allocation2 + $0xc0] sm:$0xff] }
  0x14   :  { %v1106_v20 = vld [vmem:[#allocation2 + $0x20] sm:$0xff]  ;;  %v1121_v22 = vld [vmem:[#allocation2 + $0x98] sm:$0xff]  ;;  %v1127_v23 = vld [vmem:[#allocation2 + $0xc8] sm:$0xff] }
  0x15   :  { %v1114_v21 = vld [vmem:[#allocation2 + $0x60] sm:$0xff]  ;;  %v1107_v24 = vld [vmem:[#allocation2 + $0x28] sm:$0xff]  ;;  %v1128_v27 = vld [vmem:[#allocation2 + $0xd0] sm:$0xff] }
  0x16   :  { %378 = vmatpush.bf16.msra.mxu0 %v1139_v2  ;;  %1339 = vmatpush.bf16.msra.mxu1 %v1139_v2  ;;  %v1115_v25 = vld [vmem:[#allocation2 + $0x68] sm:$0xff]  ;;  %v1122_v26 = vld [vmem:[#allocation2 + $0xa0] sm:$0xff]  ;;  %v1108_v28 = vld [vmem:[#allocation2 + $0x30] sm:$0xff] }
  0x17   :  { %1340 = vmatpush.bf16.msra.mxu2 %v1139_v2  ;;  %1341 = vmatpush.bf16.msra.mxu3 %v1139_v2  ;;  %v1116_v29 = vld [vmem:[#allocation2 + $0x70] sm:$0xff]  ;;  %v1123_v30 = vld [vmem:[#allocation2 + $0xa8] sm:$0xff]  ;;  %v1129_v31 = vld [vmem:[#allocation2 + $0xd8] sm:$0xff] }
  0x18   :  { %v1109_v32 = vld [vmem:[#allocation2 + $0x38] sm:$0xff]  ;;  %v1124_v34 = vld [vmem:[#allocation2 + $0xb0] sm:$0xff]  ;;  %v1130_v35 = vld [vmem:[#allocation2 + $0xe0] sm:$0xff] }
  0x19   :  { %v1117_v33 = vld [vmem:[#allocation2 + $0x78] sm:$0xff]  ;;  %v1131_v39 = vld [vmem:[#allocation2 + $0xe8] sm:$0xff]  ;;  %v1132_v53 = vld [vmem:[#allocation2 + $0xf0] sm:$0xff] }
  0x1a   :  { %379 = vmatpush.bf16.msra.mxu0 %v1138_v3  ;;  %1342 = vmatpush.bf16.msra.mxu1 %v1138_v3  ;;  %v1125_v38 = vld [vmem:[#allocation2 + $0xb8] sm:$0xff] }
  0x1b   :  { %1343 = vmatpush.bf16.msra.mxu2 %v1138_v3  ;;  %1344 = vmatpush.bf16.msra.mxu3 %v1138_v3 }
  0x1e   :  { %380 = vmatpush.bf16.msra.mxu0 %v1137_v4  ;;  %1345 = vmatpush.bf16.msra.mxu1 %v1137_v4 }
  0x1f   :  { %1346 = vmatpush.bf16.msra.mxu2 %v1137_v4  ;;  %1347 = vmatpush.bf16.msra.mxu3 %v1137_v4 }
  0x22   :  { %381 = vmatpush.bf16.msra.mxu0 %v1136_v5  ;;  %1348 = vmatpush.bf16.msra.mxu1 %v1136_v5 }
  0x23   :  { %1349 = vmatpush.bf16.msra.mxu2 %v1136_v5  ;;  %1350 = vmatpush.bf16.msra.mxu3 %v1136_v5  ;;  %v1133_v5 = vld [vmem:[#allocation2 + $0xf8] sm:$0xff] }
  0x26   :  { %382 = vmatpush.bf16.msra.mxu0 %v1135_v6  ;;  %1351 = vmatpush.bf16.msra.mxu1 %v1135_v6 }
  0x27   :  { %1352 = vmatpush.bf16.msra.mxu2 %v1135_v6  ;;  %1353 = vmatpush.bf16.msra.mxu3 %v1135_v6 }
  0x2a   :  { %383 = vmatpush.bf16.msra.mxu0 %v1134_v7  ;;  %1354 = vmatpush.bf16.msra.mxu1 %v1134_v7 }
  0x2b   :  { %1355 = vmatpush.bf16.msra.mxu2 %v1134_v7  ;;  %1356 = vmatpush.bf16.msra.mxu3 %v1134_v7 }
  0x2d   :  { %384 = vmatmul.bf16.vlgmr.msra.gmra.mxu0 %v1102_v8  ;;  %424 = vmatmul.bf16.vlgmr.msra.gmra.mxu1 %v1110_v9 }
  0x2e   :  { %464 = vmatmul.bf16.vlgmr.msra.gmra.mxu2 %v1118_v12  ;;  %504 = vmatmul.bf16.vlgmr.msra.gmra.mxu3 %v1126_v19 }
  0x3d   :  { %389 = vmatmul.bf16.gmra.mxu0 %v1103_v10  ;;  %429 = vmatmul.bf16.gmra.mxu1 %v1111_v11 }
  0x3e   :  { %469 = vmatmul.bf16.gmra.mxu2 %v1119_v15  ;;  %509 = vmatmul.bf16.gmra.mxu3 %v1127_v23 }
  0x4d   :  { %394 = vmatmul.bf16.gmra.mxu0 %v1104_v13  ;;  %434 = vmatmul.bf16.gmra.mxu1 %v1112_v14 }
  0x4e   :  { %474 = vmatmul.bf16.gmra.mxu2 %v1120_v18  ;;  %514 = vmatmul.bf16.gmra.mxu3 %v1128_v27 }
  0x5d   :  { %399 = vmatmul.bf16.gmra.mxu0 %v1105_v16  ;;  %439 = vmatmul.bf16.gmra.mxu1 %v1113_v17 }
  0x5e   :  { %479 = vmatmul.bf16.gmra.mxu2 %v1121_v22  ;;  %519 = vmatmul.bf16.gmra.mxu3 %v1129_v31 }
  0x6d   :  { %404 = vmatmul.bf16.gmra.mxu0 %v1106_v20  ;;  %444 = vmatmul.bf16.gmra.mxu1 %v1114_v21 }
  0x6e   :  { %484 = vmatmul.bf16.gmra.mxu2 %v1122_v26  ;;  %524 = vmatmul.bf16.gmra.mxu3 %v1130_v35 }
  0x7d   :  { %409 = vmatmul.bf16.gmra.mxu0 %v1107_v24  ;;  %449 = vmatmul.bf16.gmra.mxu1 %v1115_v25 }
  0x7e   :  { %489 = vmatmul.bf16.gmra.mxu2 %v1123_v30  ;;  %529 = vmatmul.bf16.gmra.mxu3 %v1131_v39 }
  0x8d   :  { %414 = vmatmul.bf16.gmra.mxu0 %v1108_v28  ;;  %454 = vmatmul.bf16.gmra.mxu1 %v1116_v29 }
  0x8e   :  { %494 = vmatmul.bf16.gmra.mxu2 %v1124_v34  ;;  %534 = vmatmul.bf16.gmra.mxu3 %v1132_v53 }
  0x9d   :  { %419 = vmatmul.bf16.gmra.mxu0 %v1109_v32  ;;  %459 = vmatmul.bf16.gmra.mxu1 %v1117_v33 }
  0x9e   :  { %499 = vmatmul.bf16.gmra.mxu2 %v1125_v38  ;;  %539 = vmatmul.bf16.gmra.mxu3 %v1133_v5 }
  0xaa   :  { %v385_v36 = vpop.f32.mrf.mxu0  ;;  %v1538_v37 = vpop.f32.mrf.mxu1 }
  0xab   :  { %v752_v40 = vmul.f32 %v385_v36, %v385_v36 }
  0xb1   :  { %v1550_v60 = vpop.f32.mrf.mxu2  ;;  %v1580_v20 = vpop.f32.mrf.mxu3 }
  0xb2   :  { %v387_v41 = vpop.f32.mrf.mxu0  ;;  %v1540_v42 = vpop.f32.mrf.mxu1 }
  0xb3   :  { %v1145_v43 = vpack.c.bf16 %v387_v41, %v385_v36  ;;  %v680_v44 = vadd.f32 %v387_v41, %v385_v36  ;;  %v753_v45 = vmul.f32 %v387_v41, %v387_v41  ;;  %v1185_v46 = vpack.c.bf16 %v1540_v42, %v1538_v37 }
  0xb5   :  { %1146 = vst [vmem:[#allocation7] sm:$0xff] %v1145_v43   ;;  %v816_v47 = vadd.f32 %v753_v45, %v752_v40 }
  0xb6   :  { %1309 = vst [vmem:[#allocation7 + $0x40] sm:$0xff] %v1185_v46  }
  0xb9   :  { %v1556_v2 = vpop.f32.mrf.mxu2  ;;  %v1586_v24 = vpop.f32.mrf.mxu3 }
  0xba   :  { %v390_v48 = vpop.f32.mrf.mxu0  ;;  %v1544_v49 = vpop.f32.mrf.mxu1  ;;  %v1225_v3 = vpack.c.bf16 %v1556_v2, %v1550_v60  ;;  %v1265_v26 = vpack.c.bf16 %v1586_v24, %v1580_v20 }
  0xbb   :  { %v681_v50 = vadd.f32 %v680_v44, %v390_v48  ;;  %v754_v51 = vmul.f32 %v390_v48, %v390_v48 }
  0xbc   :  { %1317 = vst [vmem:[#allocation7 + $0x80] sm:$0xff] %v1225_v3  }
  0xbd   :  { %v817_v52 = vadd.f32 %v816_v47, %v754_v51  ;;  %1325 = vst [vmem:[#allocation7 + $0xc0] sm:$0xff] %v1265_v26  }
  0xc1   :  { %v1566_v10 = vpop.f32.mrf.mxu2  ;;  %v1598_v32 = vpop.f32.mrf.mxu3 }
  0xc2   :  { %v392_v54 = vpop.f32.mrf.mxu0  ;;  %v1546_v55 = vpop.f32.mrf.mxu1 }
  0xc3   :  { %v1150_v56 = vpack.c.bf16 %v392_v54, %v390_v48  ;;  %v682_v57 = vadd.f32 %v681_v50, %v392_v54  ;;  %v755_v58 = vmul.f32 %v392_v54, %v392_v54  ;;  %v1190_v59 = vpack.c.bf16 %v1546_v55, %v1544_v49 }
  0xc5   :  { %1302 = vst [vmem:[#allocation7 + $0x8] sm:$0xff] %v1150_v56   ;;  %v818_v61 = vadd.f32 %v817_v52, %v755_v58 }
  0xc6   :  { %1310 = vst [vmem:[#allocation7 + $0x48] sm:$0xff] %v1190_v59  }
  0xc9   :  { %v1570_v13 = vpop.f32.mrf.mxu2  ;;  %v1604_v36 = vpop.f32.mrf.mxu3 }
  0xca   :  { %v395_v62 = vpop.f32.mrf.mxu0  ;;  %v1552_v63 = vpop.f32.mrf.mxu1  ;;  %v1230_v14 = vpack.c.bf16 %v1570_v13, %v1566_v10  ;;  %v1270_v39 = vpack.c.bf16 %v1604_v36, %v1598_v32 }
  0xcb   :  { %v1554_v0 = vadd.f32 %v682_v57, %v395_v62  ;;  %v756_v1 = vmul.f32 %v395_v62, %v395_v62 }
  0xcc   :  { %1318 = vst [vmem:[#allocation7 + $0x88] sm:$0xff] %v1230_v14  }
  0xcd   :  { %v1560_v4 = vadd.f32 %v818_v61, %v756_v1  ;;  %1326 = vst [vmem:[#allocation7 + $0xc8] sm:$0xff] %v1270_v39  }
  0xd1   :  { %v1578_v19 = vpop.f32.mrf.mxu2  ;;  %v1616_v46 = vpop.f32.mrf.mxu3 }
  0xd2   :  { %v397_v6 = vpop.f32.mrf.mxu0  ;;  %v1562_v7 = vpop.f32.mrf.mxu1 }
  0xd3   :  { %v1155_v8 = vpack.c.bf16 %v397_v6, %v395_v62  ;;  %v1195_v9 = vpack.c.bf16 %v1562_v7, %v1552_v63  ;;  %v757_v52 = vmul.f32 %v397_v6, %v397_v6  ;;  %v684_v57 = vadd.f32 %v1554_v0, %v397_v6 }
  0xd5   :  { %1303 = vst [vmem:[#allocation7 + $0x10] sm:$0xff] %v1155_v8   ;;  %v820_v58 = vadd.f32 %v1560_v4, %v757_v52 }
  0xd6   :  { %1311 = vst [vmem:[#allocation7 + $0x50] sm:$0xff] %v1195_v9  }
  0xd9   :  { %v1584_v23 = vpop.f32.mrf.mxu2  ;;  %v1622_v51 = vpop.f32.mrf.mxu3 }
  0xda   :  { %v400_v11 = vpop.f32.mrf.mxu0  ;;  %v1568_v12 = vpop.f32.mrf.mxu1  ;;  %v1235_v25 = vpack.c.bf16 %v1584_v23, %v1578_v19  ;;  %v1275_v54 = vpack.c.bf16 %v1622_v51, %v1616_v46 }
  0xdb   :  { %v758_v56 = vmul.f32 %v400_v11, %v400_v11  ;;  %v685_v61 = vadd.f32 %v684_v57, %v400_v11 }
  0xdc   :  { %1319 = vst [vmem:[#allocation7 + $0x90] sm:$0xff] %v1235_v25  }
  0xdd   :  { %1327 = vst [vmem:[#allocation7 + $0xd0] sm:$0xff] %v1275_v54   ;;  %v821_v62 = vadd.f32 %v820_v58, %v758_v56 }
  0xe1   :  { %v1596_v31 = vpop.f32.mrf.mxu2 }
  0xe2   :  { %v402_v15 = vpop.f32.mrf.mxu0  ;;  %v1574_v16 = vpop.f32.mrf.mxu1 }
  0xe3   :  { %v1160_v17 = vpack.c.bf16 %v402_v15, %v400_v11  ;;  %v1200_v18 = vpack.c.bf16 %v1574_v16, %v1568_v12  ;;  %v759_v59 = vmul.f32 %v402_v15, %v402_v15  ;;  %v686_v8 = vadd.f32 %v685_v61, %v402_v15 }
  0xe5   :  { %1304 = vst [vmem:[#allocation7 + $0x18] sm:$0xff] %v1160_v17   ;;  %v822_v0 = vadd.f32 %v821_v62, %v759_v59 }
  0xe6   :  { %1312 = vst [vmem:[#allocation7 + $0x58] sm:$0xff] %v1200_v18   ;;  %v1636_v18 = vpop.f32.mrf.mxu3 }
  0xe9   :  { %v1602_v35 = vpop.f32.mrf.mxu2 }
  0xea   :  { %v405_v21 = vpop.f32.mrf.mxu0  ;;  %v1582_v22 = vpop.f32.mrf.mxu1  ;;  %v1240_v38 = vpack.c.bf16 %v1602_v35, %v1596_v31 }
  0xeb   :  { %v760_v1 = vmul.f32 %v405_v21, %v405_v21  ;;  %v687_v25 = vadd.f32 %v686_v8, %v405_v21 }
  0xec   :  { %1320 = vst [vmem:[#allocation7 + $0x98] sm:$0xff] %v1240_v38  }
  0xed   :  { %v823_v4 = vadd.f32 %v822_v0, %v760_v1 }
  0xee   :  { %v1642_v54 = vpop.f32.mrf.mxu3 }
  0xf1   :  { %v1614_v45 = vpop.f32.mrf.mxu2 }
  0xf2   :  { %v407_v27 = vpop.f32.mrf.mxu0  ;;  %v1592_v28 = vpop.f32.mrf.mxu1 }
  0xf3   :  { %v1165_v29 = vpack.c.bf16 %v407_v27, %v405_v21  ;;  %v1205_v30 = vpack.c.bf16 %v1592_v28, %v1582_v22  ;;  %v761_v6 = vmul.f32 %v407_v27, %v407_v27  ;;  %v688_v26 = vadd.f32 %v687_v25, %v407_v27 }
  0xf4   :  { %v1280_v27 = vpack.c.bf16 %v1642_v54, %v1636_v18 }
  0xf5   :  { %1305 = vst [vmem:[#allocation7 + $0x20] sm:$0xff] %v1165_v29   ;;  %v824_v29 = vadd.f32 %v823_v4, %v761_v6 }
  0xf6   :  { %1313 = vst [vmem:[#allocation7 + $0x60] sm:$0xff] %v1205_v30  }
  0xf7   :  { %1328 = vst [vmem:[#allocation7 + $0xd8] sm:$0xff] %v1280_v27  }
  0xf9   :  { %v1620_v50 = vpop.f32.mrf.mxu2 }
  0xfa   :  { %v410_v33 = vpop.f32.mrf.mxu0  ;;  %v1600_v34 = vpop.f32.mrf.mxu1  ;;  %v1245_v53 = vpack.c.bf16 %v1620_v50, %v1614_v45 }
  0xfb   :  { %v762_v11 = vmul.f32 %v410_v33, %v410_v33  ;;  %v689_v38 = vadd.f32 %v688_v26, %v410_v33 }
  0xfc   :  { %1321 = vst [vmem:[#allocation7 + $0xa0] sm:$0xff] %v1245_v53  }
  0xfd   :  { %v825_v15 = vadd.f32 %v824_v29, %v762_v11  ;;  %v769_v29 = vmul.f32 %v1540_v42, %v1540_v42 }
 0x101   :  { %v1634_v17 = vpop.f32.mrf.mxu2 }
 0x102   :  { %v412_v40 = vpop.f32.mrf.mxu0  ;;  %v1610_v41 = vpop.f32.mrf.mxu1 }
 0x103   :  { %v1170_v43 = vpack.c.bf16 %v412_v40, %v410_v33  ;;  %v1210_v44 = vpack.c.bf16 %v1610_v41, %v1600_v34  ;;  %v763_v30 = vmul.f32 %v412_v40, %v412_v40  ;;  %v690_v52 = vadd.f32 %v689_v38, %v412_v40 }
 0x105   :  { %1306 = vst [vmem:[#allocation7 + $0x28] sm:$0xff] %v1170_v43   ;;  %v826_v56 = vadd.f32 %v825_v15, %v763_v30  ;;  %v770_v15 = vmul.f32 %v1544_v49, %v1544_v49 }
 0x106   :  { %1314 = vst [vmem:[#allocation7 + $0x68] sm:$0xff] %v1210_v44  }
 0x109   :  { %v1640_v53 = vpop.f32.mrf.mxu2 }
 0x10a   :  { %v415_v47 = vpop.f32.mrf.mxu0  ;;  %v1618_v48 = vpop.f32.mrf.mxu1  ;;  %v1250_v57 = vpack.c.bf16 %v1640_v53, %v1634_v17 }
 0x10b   :  { %v764_v39 = vmul.f32 %v415_v47, %v415_v47  ;;  %v691_v58 = vadd.f32 %v690_v52, %v415_v47  ;;  %v771_v52 = vmul.f32 %v1546_v55, %v1546_v55 }
 0x10c   :  { %1322 = vst [vmem:[#allocation7 + $0xa8] sm:$0xff] %v1250_v57  }
 0x10d   :  { %v827_v33 = vadd.f32 %v826_v56, %v764_v39 }
 0x111   :  { %v1652_v4 = vpop.f32.mrf.mxu2 }
 0x112   :  { %v417_v3 = vpop.f32.mrf.mxu0  ;;  %v1630_v5 = vpop.f32.mrf.mxu1 }
 0x113   :  { %v1175_v9 = vpack.c.bf16 %v417_v3, %v415_v47  ;;  %v1215_v14 = vpack.c.bf16 %v1630_v5, %v1618_v48  ;;  %v765_v21 = vmul.f32 %v417_v3, %v417_v3  ;;  %v692_v61 = vadd.f32 %v691_v58, %v417_v3  ;;  %v1654_v47 = vpop.f32.mrf.mxu3 }
 0x114   :  { %v768_v3 = vmul.f32 %v1538_v37, %v1538_v37 }
 0x115   :  { %1307 = vst [vmem:[#allocation7 + $0x30] sm:$0xff] %v1175_v9   ;;  %v828_v62 = vadd.f32 %v827_v33, %v765_v21 }
 0x116   :  { %1315 = vst [vmem:[#allocation7 + $0x70] sm:$0xff] %v1215_v14  }
 0x119   :  { %v1668_v21 = vpop.f32.mrf.mxu2 }
 0x11a   :  { %v420_v43 = vpop.f32.mrf.mxu0  ;;  %v1638_v44 = vpop.f32.mrf.mxu1 }
 0x11b   :  { %v766_v59 = vmul.f32 %v420_v43, %v420_v43  ;;  %v693_v40 = vadd.f32 %v692_v61, %v420_v43  ;;  %v1670_v57 = vpop.f32.mrf.mxu3 }
 0x11c   :  { %v1285_v27 = vpack.c.bf16 %v1670_v57, %v1654_v47 }
 0x11d   :  { %v829_v1 = vadd.f32 %v828_v62, %v766_v59  ;;  %v774_v62 = vmul.f32 %v1568_v12, %v1568_v12 }
 0x11e   :  { %1329 = vst [vmem:[#allocation7 + $0xe0] sm:$0xff] %v1285_v27   ;;  %v781_v27 = vmul.f32 %v1630_v5, %v1630_v5 }
 0x122   :  { %v422_v8 = vpop.f32.mrf.mxu0  ;;  %v1648_v9 = vpop.f32.mrf.mxu1 }
 0x123   :  { %v1180_v14 = vpack.c.bf16 %v422_v8, %v420_v43  ;;  %v694_v0 = vadd.f32 %v693_v40, %v422_v8  ;;  %v767_v6 = vmul.f32 %v422_v8, %v422_v8  ;;  %v1220_v25 = vpack.c.bf16 %v1648_v9, %v1638_v44 }
 0x124   :  { %v775_v8 = vmul.f32 %v1574_v16, %v1574_v16 }
 0x125   :  { %1308 = vst [vmem:[#allocation7 + $0x38] sm:$0xff] %v1180_v14   ;;  %v695_v11 = vadd.f32 %v694_v0, %v1538_v37  ;;  %v830_v26 = vadd.f32 %v829_v1, %v767_v6  ;;  %v1688_v0 = vpop.f32.mrf.mxu2  ;;  %v1690_v6 = vpop.f32.mrf.mxu3 }
 0x126   :  { %1316 = vst [vmem:[#allocation7 + $0x78] sm:$0xff] %v1220_v25  }
 0x127   :  { %v696_v30 = vadd.f32 %v695_v11, %v1540_v42  ;;  %v831_v38 = vadd.f32 %v830_v26, %v768_v3  ;;  %v1255_v42 = vpack.c.bf16 %v1668_v21, %v1652_v4  ;;  %v777_v11 = vmul.f32 %v1592_v28, %v1592_v28 }
 0x129   :  { %v697_v39 = vadd.f32 %v696_v30, %v1544_v49  ;;  %v832_v43 = vadd.f32 %v831_v38, %v769_v29  ;;  %v772_v49 = vmul.f32 %v1552_v63, %v1552_v63  ;;  %1323 = vst [vmem:[#allocation7 + $0xb0] sm:$0xff] %v1255_v42   ;;  %v779_v38 = vmul.f32 %v1610_v41, %v1610_v41 }
 0x12b   :  { %v698_v56 = vadd.f32 %v697_v39, %v1546_v55  ;;  %v833_v37 = vadd.f32 %v832_v43, %v770_v15  ;;  %v773_v55 = vmul.f32 %v1562_v7, %v1562_v7 }
 0x12d   :  { %v699_v58 = vadd.f32 %v698_v56, %v1552_v63  ;;  %v834_v33 = vadd.f32 %v833_v37, %v771_v52  ;;  %v1706_v43 = vpop.f32.mrf.mxu3 }
 0x12e   :  { %v1290_v52 = vpack.c.bf16 %v1706_v43, %v1690_v6 }
 0x12f   :  { %v700_v59 = vadd.f32 %v699_v58, %v1562_v7  ;;  %v835_v61 = vadd.f32 %v834_v33, %v772_v49  ;;  %v776_v7 = vmul.f32 %v1582_v22, %v1582_v22  ;;  %v782_v33 = vmul.f32 %v1638_v44, %v1638_v44 }
 0x130   :  { %1330 = vst [vmem:[#allocation7 + $0xe8] sm:$0xff] %v1290_v52   ;;  %v792_v52 = vmul.f32 %v1614_v45, %v1614_v45 }
 0x131   :  { %v836_v40 = vadd.f32 %v835_v61, %v773_v55  ;;  %v701_v1 = vadd.f32 %v700_v59, %v1568_v12 }
 0x133   :  { %v702_v63 = vadd.f32 %v701_v1, %v1574_v16  ;;  %v837_v14 = vadd.f32 %v836_v40, %v774_v62  ;;  %v778_v16 = vmul.f32 %v1600_v34, %v1600_v34  ;;  %v784_v62 = vmul.f32 %v1550_v60, %v1550_v60 }
 0x134   :  { %v785_v1 = vmul.f32 %v1556_v2, %v1556_v2 }
 0x135   :  { %v703_v25 = vadd.f32 %v702_v63, %v1582_v22  ;;  %v838_v3 = vadd.f32 %v837_v14, %v775_v8  ;;  %v1704_v22 = vpop.f32.mrf.mxu2  ;;  %v1724_v61 = vpop.f32.mrf.mxu3  ;;  %v786_v63 = vmul.f32 %v1566_v10, %v1566_v10 }
 0x137   :  { %v704_v12 = vadd.f32 %v703_v25, %v1592_v28  ;;  %v839_v26 = vadd.f32 %v838_v3, %v776_v7  ;;  %v1260_v28 = vpack.c.bf16 %v1704_v22, %v1688_v0  ;;  %v787_v7 = vmul.f32 %v1570_v13, %v1570_v13 }
 0x139   :  { %v705_v29 = vadd.f32 %v704_v12, %v1600_v34  ;;  %v840_v30 = vadd.f32 %v839_v26, %v777_v11  ;;  %v780_v34 = vmul.f32 %v1618_v48, %v1618_v48  ;;  %1324 = vst [vmem:[#allocation7 + $0xb8] sm:$0xff] %v1260_v28  }
 0x13b   :  { %v706_v15 = vadd.f32 %v705_v29, %v1610_v41  ;;  %v841_v39 = vadd.f32 %v840_v30, %v778_v16 }
 0x13d   :  { %v707_v56 = vadd.f32 %v706_v15, %v1618_v48  ;;  %v842_v37 = vadd.f32 %v841_v39, %v779_v38  ;;  %v783_v48 = vmul.f32 %v1648_v9, %v1648_v9  ;;  %v791_v15 = vmul.f32 %v1602_v35, %v1602_v35 }
 0x13f   :  { %v843_v42 = vadd.f32 %v842_v37, %v780_v34  ;;  %v708_v41 = vadd.f32 %v707_v56, %v1630_v5  ;;  %v793_v34 = vmul.f32 %v1620_v50, %v1620_v50 }
 0x141   :  { %v844_v49 = vadd.f32 %v843_v42, %v781_v27  ;;  %v709_v58 = vadd.f32 %v708_v41, %v1638_v44  ;;  %v794_v42 = vmul.f32 %v1634_v17, %v1634_v17  ;;  %v795_v27 = vmul.f32 %v1640_v53, %v1640_v53 }
 0x143   :  { %v845_v55 = vadd.f32 %v844_v49, %v782_v33  ;;  %v710_v59 = vadd.f32 %v709_v58, %v1648_v9 }
 0x145   :  { %v711_v5 = vadd.f32 %v710_v59, %v1550_v60  ;;  %v846_v40 = vadd.f32 %v845_v55, %v783_v48  ;;  %v1738_v60 = vpop.f32.mrf.mxu3  ;;  %v796_v55 = vmul.f32 %v1652_v4, %v1652_v4 }
 0x146   :  { %v1295_v11 = vpack.c.bf16 %v1738_v60, %v1724_v61 }
 0x147   :  { %v712_v8 = vadd.f32 %v711_v5, %v1556_v2  ;;  %v847_v44 = vadd.f32 %v846_v40, %v784_v62  ;;  %v788_v2 = vmul.f32 %v1578_v19, %v1578_v19  ;;  %v798_v40 = vmul.f32 %v1688_v0, %v1688_v0 }
 0x148   :  { %1331 = vst [vmem:[#allocation7 + $0xf0] sm:$0xff] %v1295_v11   ;;  %v1498_v11 = vmov 0.0  }
 0x149   :  { %v713_v14 = vadd.f32 %v712_v8, %v1566_v10  ;;  %v848_v9 = vadd.f32 %v847_v44, %v785_v1  ;;  %v789_v10 = vmul.f32 %v1584_v23, %v1584_v23  ;;  %v799_v8 = vmul.f32 %v1704_v22, %v1704_v22  ;;  %677 = vst [vmem:[#allocation8] sm:$0xff] %v1498_v11 }
 0x14a   :  { %v800_v44 = vmul.f32 %v1580_v20, %v1580_v20  ;;  %678 = vst [vmem:[#allocation10] sm:$0xff] %v1498_v11 }
 0x14b   :  { %v714_v25 = vadd.f32 %v713_v14, %v1570_v13  ;;  %v849_v3 = vadd.f32 %v848_v9, %v786_v63  ;;  %v790_v13 = vmul.f32 %v1596_v31, %v1596_v31  ;;  %v801_v14 = vmul.f32 %v1586_v24, %v1586_v24 }
 0x14d   :  { %v715_v12 = vadd.f32 %v714_v25, %v1578_v19  ;;  %v850_v26 = vadd.f32 %v849_v3, %v787_v7  ;;  %v1754_v28 = vpop.f32.mrf.mxu3 }
 0x14f   :  { %v716_v16 = vadd.f32 %v715_v12, %v1584_v23  ;;  %v851_v29 = vadd.f32 %v850_v26, %v788_v2  ;;  %v804_v12 = vmul.f32 %v1616_v46, %v1616_v46 }
 0x151   :  { %v852_v30 = vadd.f32 %v851_v29, %v789_v10  ;;  %v717_v38 = vadd.f32 %v716_v16, %v1596_v31  ;;  %v805_v10 = vmul.f32 %v1622_v51, %v1622_v51  ;;  %v806_v29 = vmul.f32 %v1636_v18, %v1636_v18 }
 0x153   :  { %v718_v39 = vadd.f32 %v717_v38, %v1602_v35  ;;  %v853_v19 = vadd.f32 %v852_v30, %v790_v13 }
 0x155   :  { %v719_v23 = vadd.f32 %v718_v39, %v1614_v45  ;;  %v854_v56 = vadd.f32 %v853_v19, %v791_v15 }
 0x157   :  { %v720_v37 = vadd.f32 %v719_v23, %v1620_v50  ;;  %v855_v31 = vadd.f32 %v854_v56, %v792_v52  ;;  %v1771_v50 = vpop.f32.mrf.mxu3 }
 0x158   :  { %v1300_v58 = vpack.c.bf16 %v1771_v50, %v1754_v28 }
 0x159   :  { %v721_v35 = vadd.f32 %v720_v37, %v1634_v17  ;;  %v856_v41 = vadd.f32 %v855_v31, %v793_v34  ;;  %v811_v37 = vmul.f32 %v1706_v43, %v1706_v43 }
 0x15a   :  { %1332 = vst [vmem:[#allocation7 + $0xf8] sm:$0xff] %v1300_v58  }
 0x15b   :  { %v722_v45 = vadd.f32 %v721_v35, %v1640_v53  ;;  %v857_v49 = vadd.f32 %v856_v41, %v794_v42  ;;  %v797_v53 = vmul.f32 %v1668_v21, %v1668_v21  ;;  %903 = dma.vmem_to_hbm [thread:$0]  %s896_s1, 4096, %s898_s29, [#allocation4], %s1494_s23, %s1494_s23, %s1495_s24   ;;  %v812_v35 = vmul.f32 %v1724_v61, %v1724_v61 }
 0x15d   :  { %v858_v17 = vadd.f32 %v857_v49, %v795_v27  ;;  %v723_v33 = vadd.f32 %v722_v45, %v1652_v4  ;;  %v813_v45 = vmul.f32 %v1738_v60, %v1738_v60  ;;  %v814_v49 = vmul.f32 %v1754_v28, %v1754_v28 }
 0x15f   :  { %v859_v59 = vadd.f32 %v858_v17, %v796_v55  ;;  %v724_v48 = vadd.f32 %v723_v33, %v1668_v21  ;;  %v815_v17 = vmul.f32 %v1771_v50, %v1771_v50 }
 0x161   :  { %v860_v62 = vadd.f32 %v859_v59, %v797_v53  ;;  %v725_v5 = vadd.f32 %v724_v48, %v1688_v0  ;;  %v802_v0 = vmul.f32 %v1598_v32, %v1598_v32 }
 0x163   :  { %v861_v1 = vadd.f32 %v860_v62, %v798_v40  ;;  %v726_v4 = vadd.f32 %v725_v5, %v1704_v22  ;;  %v803_v22 = vmul.f32 %v1604_v36, %v1604_v36 }
 0x165   :  { %v727_v21 = vadd.f32 %v726_v4, %v1580_v20  ;;  %v862_v63 = vadd.f32 %v861_v1, %v799_v8  ;;  %v679_v1 = vld [vmem:[#allocation8] sm:$0x1] }
 0x167   :  { %v728_v9 = vadd.f32 %v727_v21, %v1586_v24  ;;  %v863_v7 = vadd.f32 %v862_v63, %v800_v44 }
 0x169   :  { %v729_v25 = vadd.f32 %v728_v9, %v1598_v32  ;;  %v864_v3 = vadd.f32 %v863_v7, %v801_v14 }
 0x16b   :  { %v730_v20 = vadd.f32 %v729_v25, %v1604_v36  ;;  %v865_v2 = vadd.f32 %v864_v3, %v802_v0  ;;  %v807_v36 = vmul.f32 %v1642_v54, %v1642_v54 }
 0x16d   :  { %v731_v24 = vadd.f32 %v730_v20, %v1616_v46  ;;  %v866_v26 = vadd.f32 %v865_v2, %v803_v22  ;;  %v808_v46 = vmul.f32 %v1654_v47, %v1654_v47 }
 0x16f   :  { %v732_v32 = vadd.f32 %v731_v24, %v1622_v51  ;;  %v867_v16 = vadd.f32 %v866_v26, %v804_v12  ;;  %v809_v51 = vmul.f32 %v1670_v57, %v1670_v57 }
 0x171   :  { %v868_v13 = vadd.f32 %v867_v16, %v805_v10  ;;  %v733_v30 = vadd.f32 %v732_v32, %v1636_v18  ;;  %v810_v18 = vmul.f32 %v1690_v6, %v1690_v6 }
 0x173   :  { %v734_v38 = vadd.f32 %v733_v30, %v1642_v54  ;;  %v869_v15 = vadd.f32 %v868_v13, %v806_v29 }
 0x175   :  { %v735_v39 = vadd.f32 %v734_v38, %v1654_v47  ;;  %v870_v19 = vadd.f32 %v869_v15, %v807_v36 }
 0x177   :  { %v736_v52 = vadd.f32 %v735_v39, %v1670_v57  ;;  %v871_v23 = vadd.f32 %v870_v19, %v808_v46 }
 0x179   :  { %v737_v56 = vadd.f32 %v736_v52, %v1690_v6  ;;  %v872_v34 = vadd.f32 %v871_v23, %v809_v51 }
 0x17b   :  { %v738_v54 = vadd.f32 %v737_v56, %v1706_v43  ;;  %v873_v31 = vadd.f32 %v872_v34, %v810_v18 }
 0x17d   :  { %v874_v47 = vadd.f32 %v873_v31, %v811_v37  ;;  %v739_v42 = vadd.f32 %v738_v54, %v1724_v61 }
 0x17f   :  { %v875_v57 = vadd.f32 %v874_v47, %v812_v35  ;;  %v740_v41 = vadd.f32 %v739_v42, %v1738_v60 }
 0x181   :  { %v876_v6 = vadd.f32 %v875_v57, %v813_v45  ;;  %v741_v27 = vadd.f32 %v740_v41, %v1754_v28 }
 0x183   :  { %v877_v43 = vadd.f32 %v876_v6, %v814_v49  ;;  %v742_v58 = vadd.f32 %v741_v27, %v1771_v50  ;;  %v751_v50 = vld [vmem:[#allocation10] sm:$0x1] }
 0x185   :  { %v743_v33 = vrot.slane %v742_v58, 4  ;;  %v878_v61 = vadd.f32 %v877_v43, %v815_v17 }
 0x187   :  { %v744_v55 = vadd.f32 %v743_v33, %v742_v58  ;;  %v879_v59 = vrot.slane %v878_v61, 4 }
 0x189   :  { %v745_v48 = vrot.slane %v744_v55, 2  ;;  %v880_v53 = vadd.f32 %v879_v59, %v878_v61 }
 0x18b   :  { %v746_v62 = vadd.f32 %v745_v48, %v744_v55  ;;  %v881_v60 = vrot.slane %v880_v53, 2 }
 0x18d   :  { %v747_v5 = vrot.slane %v746_v62, 1  ;;  %v882_v40 = vadd.f32 %v881_v60, %v880_v53 }
 0x18f   :  { %v748_v28 = vadd.f32 %v747_v5, %v746_v62  ;;  %v883_v4 = vrot.slane %v882_v40, 1 }
 0x191   :  { %v884_v8 = vadd.f32 %v883_v4, %v882_v40  ;;  %v749_v44 = vadd.f32 %v748_v28, %v679_v1 }
 0x193   :  { %750 = vst [vmem:[#allocation8] sm:$0x1] %v749_v44  ;;  %v885_v21 = vadd.f32 %v884_v8, %v751_v50 }
 0x194   :  { %914 = dma.vmem_to_hbm [thread:$0]  %s910_s30, 128, %s912_s7, [#allocation9]  }
 0x195   :  { %886 = vst [vmem:[#allocation10] sm:$0x1] %v885_v21 }
 0x196   :  { %925 = dma.vmem_to_hbm [thread:$0]  %s921_s9, 128, %s923_s12, [#allocation9]  }
 0x197   :  { %1489 = dma.done.wait [#allocation4], 4096  }
 0x198   :  { %1490 = vsyncadd [#allocation4], 4294963200 }
 0x199   :  { %1491 = dma.done.wait [#allocation9], 256  }
 0x19a   :  { %1492 = vsyncadd [#allocation9], 4294967040 }
 0x19b   :  { %938 = vsyncpa [#allocation3], 1 }
 0x19c   :  { %939 = vsyncpa [#allocation6], 1 }
 0x19d   :  { %940 = vsyncpa [#allocation4], 1 }
 0x19e   :  { %941 = vsyncpa [#allocation9], 1 }

</bundles_post_ra>
